<compile_context>
chip_gen: v6e
topology: v6e:2x2x1
jax: 0.10.0
libtpu: 0.0.40
codegen_flags: <defaults>
</compile_context>

<pallas_src>
import jax
import jax.numpy as jnp
from jax.experimental import pallas as pl
from jax.experimental.pallas import tpu as pltpu

_FALLBACK_VMEM_BYTES = 128 * 1024 * 1024  # v5e/v6e physical VMEM


def _vmem_capacity_bytes():
    try:
        return int(pltpu.get_tpu_info().vmem_capacity_bytes)
    except Exception:
        return _FALLBACK_VMEM_BYTES


def _sublane_tile(dtype):
    """Packed sublane tile height for a dtype (8 for 4B, 16 for 2B, 32 for 1B)."""
    itemsize = jnp.dtype(dtype).itemsize
    if itemsize >= 4:
        return 8
    if itemsize == 2:
        return 16
    return 32


def _padded_block_bytes(bn, t, c, dtype):
    """VMEM footprint of a (bn, t, c) block including sublane/lane padding."""
    itemsize = jnp.dtype(dtype).itemsize
    t_pad = int(pl.cdiv(t, _sublane_tile(dtype))) * _sublane_tile(dtype)
    c_pad = int(pl.cdiv(c, 128)) * 128
    return bn * t_pad * c_pad * itemsize


def _pick_batch_block(n, t, c, dtype):
    """Pick BN (multiple of 8): ~8 MiB input blocks, VMEM-capacity aware."""
    row_bytes = max(_padded_block_bytes(1, t, c, dtype), 1)
    vmem_cap = _vmem_capacity_bytes()
    # One input block ~8 MiB, but never more than 1/8 of physical VMEM so that
    # double-buffered inputs + outputs + headroom fit even on v7x (64 MiB).
    target_bytes = min(8 * 1024 * 1024, vmem_cap // 8)

    bn = (target_bytes // row_bytes) // 8 * 8
    bn = max(8, int(bn))
    # No point making the block larger than the (8-rounded) batch itself.
    bn = min(bn, int(pl.cdiv(n, 8)) * 8)
    # Keep at least two grid steps when possible so both v7x TensorCores get
    # work (harmless on single-TC v5e/v6e).
    if n > 8:
        bn = min(bn, ((n - 1) // 8) * 8)
    return max(8, bn)


def _avg_consensus_kernel(x_ref, o_ref):
    # x_ref: (BN, T, C) tile of batch rows; o_ref: (BN, C) dense output tile.
    t_total = x_ref.shape[1]
    inv_t = jnp.float32(1.0 / t_total)
    if t_total <= 64:
        # Unrolled accumulate: cast + add one (BN, C) slab at a time on the
        # VALU.  No full-block f32 temporary, no cross-sublane XLU reduce.
        acc = x_ref[:, 0, :].astype(jnp.float32)
        for t in range(1, t_total):
            acc = acc + x_ref[:, t, :].astype(jnp.float32)
    else:
        # Large-T fallback: let the compiler pick the reduction strategy.
        acc = jnp.sum(x_ref[...], axis=1, dtype=jnp.float32)
    o_ref[...] = (acc * inv_t).astype(o_ref.dtype)


def segment_consensus(x, consensus_type, dim=1):
    """Pallas implementation of SegmentConsensus.forward.

    x: jnp array of shape (N, T, C); dim must be 1 (module default).
    """
    if consensus_type == "identity":
        # Module semantics: return the input unchanged. No kernel / no copy.
        return x
    if consensus_type != "avg":
        return None  # matches PyTorch module behavior for unknown types

    assert dim == 1, "kernel implements the module's default dim=1"
    N, T, C = x.shape
    itemsize = jnp.dtype(x.dtype).itemsize

    bn = _pick_batch_block(N, T, C, x.dtype)
    n_blocks = int(pl.cdiv(N, bn))  # ragged final block handled by Pallas masking

    # Scoped-VMEM budget: double-buffered input + output blocks + headroom,
    # never below the default and never above the chip's physical VMEM.
    in_block_bytes = _padded_block_bytes(bn, T, C, x.dtype)
    out_block_bytes = _padded_block_bytes(bn, 1, C, x.dtype)
    vmem_limit = 2 * in_block_bytes + 2 * out_block_bytes + (4 << 20)
    vmem_limit = max(vmem_limit, 16 << 20)
    vmem_limit = min(vmem_limit, _vmem_capacity_bytes())

    cost = pl.CostEstimate(
        flops=N * T * C,
        transcendentals=0,
        bytes_accessed=(N * T * C + N * C) * itemsize,
    )

    out = pl.pallas_call(
        _avg_consensus_kernel,
        out_shape=jax.ShapeDtypeStruct((N, C), x.dtype),
        grid_spec=pltpu.PrefetchScalarGridSpec(
            num_scalar_prefetch=0,
            grid=(n_blocks,),
            in_specs=[pl.BlockSpec((bn, T, C), lambda b: (b, 0, 0))],
            out_specs=pl.BlockSpec((bn, C), lambda b: (b, 0)),
        ),
        compiler_params=pltpu.CompilerParams(
            dimension_semantics=("parallel",),
            vmem_limit_bytes=int(vmem_limit),
        ),
        cost_estimate=cost,
    )(x)

    # Restore keepdim=True semantics.
    return out[:, None, :]


if __name__ == "__main__":
    root = jax.random.PRNGKey(0)
    k0, k1, k2 = jax.random.split(root, 3)

    # --- 'avg' consensus, aligned shapes -------------------------------------
    N, T, C = 2, 8, 128  # batch=2, segments=8, features=128
    x = jax.random.normal(k0, (N, T, C), dtype=jnp.float32)

    out_avg = jax.block_until_ready(segment_consensus(x, "avg", dim=1))
    ref_avg = jnp.mean(x, axis=1, keepdims=True)
    assert out_avg.shape == (N, 1, C)
    assert jnp.allclose(out_avg, ref_avg, atol=1e-5, rtol=1e-5)

    # --- 'avg' consensus, ragged shapes (exercises ragged final block + C<128)
    N2, T2, C2 = 10, 6, 96
    x2 = jax.random.normal(k1, (N2, T2, C2), dtype=jnp.float32)
    out_avg2 = jax.block_until_ready(segment_consensus(x2, "avg", dim=1))
    ref_avg2 = jnp.mean(x2, axis=1, keepdims=True)
    assert out_avg2.shape == (N2, 1, C2)
    assert jnp.allclose(out_avg2, ref_avg2, atol=1e-5, rtol=1e-5)

    # --- 'avg' consensus, bf16 input (exercises per-slab f32 accumulate) -----
    N3, T3, C3 = 4, 3, 256
    x3 = jax.random.normal(k2, (N3, T3, C3), dtype=jnp.float32).astype(jnp.bfloat16)
    out_avg3 = jax.block_until_ready(segment_consensus(x3, "avg", dim=1))
    ref_avg3 = jnp.mean(x3.astype(jnp.float32), axis=1, keepdims=True)
    assert out_avg3.shape == (N3, 1, C3)
    assert jnp.allclose(out_avg3.astype(jnp.float32), ref_avg3, atol=2e-2, rtol=2e-2)

    # --- 'identity' consensus: passthrough, no kernel ------------------------
    out_id = jax.block_until_ready(segment_consensus(x, "identity", dim=1))
    assert out_id.shape == x.shape
    assert jnp.allclose(out_id, x)

    # --- unknown consensus type -> None (module semantics) -------------------
    assert segment_consensus(x, "max", dim=1) is None

    print("KERNEL_OK")
</pallas_src>

<mosaic_0001>
module attributes {stable_mosaic.version = 11 : i64} {
  func.func @_avg_consensus_kernel(%arg0: i32, %arg1: memref<8x8x128xf32, #tpu.memory_space<vmem>>, %arg2: memref<8x128xf32, #tpu.memory_space<vmem>>) attributes {dimension_semantics = [#tpu.dimension_semantics<parallel>], iteration_bounds = array<i64: 1>, scalar_prefetch = 0 : i64, scratch_operands = 0 : i64, tpu.core_type = #tpu.core_type<tc>, window_params = [{transform_indices = @transform_0, window_bounds = array<i64: 8, 8, 128>}, {transform_indices = @transform_1, window_bounds = array<i64: 8, 128>}]} {
    %c0 = arith.constant 0 : index
    %c0_0 = arith.constant 0 : index
    %c0_1 = arith.constant 0 : index
    %0 = vector.load %arg1[%c0, %c0_0, %c0_1] : memref<8x8x128xf32, #tpu.memory_space<vmem>>, vector<8x1x128xf32>
    %1 = vector.shape_cast %0 : vector<8x1x128xf32> to vector<8x128xf32>
    %c0_2 = arith.constant 0 : index
    %c1 = arith.constant 1 : index
    %c0_3 = arith.constant 0 : index
    %2 = vector.load %arg1[%c0_2, %c1, %c0_3] : memref<8x8x128xf32, #tpu.memory_space<vmem>>, vector<8x1x128xf32>
    %3 = vector.shape_cast %2 : vector<8x1x128xf32> to vector<8x128xf32>
    %4 = arith.addf %1, %3 : vector<8x128xf32>
    %c0_4 = arith.constant 0 : index
    %c2 = arith.constant 2 : index
    %c0_5 = arith.constant 0 : index
    %5 = vector.load %arg1[%c0_4, %c2, %c0_5] : memref<8x8x128xf32, #tpu.memory_space<vmem>>, vector<8x1x128xf32>
    %6 = vector.shape_cast %5 : vector<8x1x128xf32> to vector<8x128xf32>
    %7 = arith.addf %4, %6 : vector<8x128xf32>
    %c0_6 = arith.constant 0 : index
    %c3 = arith.constant 3 : index
    %c0_7 = arith.constant 0 : index
    %8 = vector.load %arg1[%c0_6, %c3, %c0_7] : memref<8x8x128xf32, #tpu.memory_space<vmem>>, vector<8x1x128xf32>
    %9 = vector.shape_cast %8 : vector<8x1x128xf32> to vector<8x128xf32>
    %10 = arith.addf %7, %9 : vector<8x128xf32>
    %c0_8 = arith.constant 0 : index
    %c4 = arith.constant 4 : index
    %c0_9 = arith.constant 0 : index
    %11 = vector.load %arg1[%c0_8, %c4, %c0_9] : memref<8x8x128xf32, #tpu.memory_space<vmem>>, vector<8x1x128xf32>
    %12 = vector.shape_cast %11 : vector<8x1x128xf32> to vector<8x128xf32>
    %13 = arith.addf %10, %12 : vector<8x128xf32>
    %c0_10 = arith.constant 0 : index
    %c5 = arith.constant 5 : index
    %c0_11 = arith.constant 0 : index
    %14 = vector.load %arg1[%c0_10, %c5, %c0_11] : memref<8x8x128xf32, #tpu.memory_space<vmem>>, vector<8x1x128xf32>
    %15 = vector.shape_cast %14 : vector<8x1x128xf32> to vector<8x128xf32>
    %16 = arith.addf %13, %15 : vector<8x128xf32>
    %c0_12 = arith.constant 0 : index
    %c6 = arith.constant 6 : index
    %c0_13 = arith.constant 0 : index
    %17 = vector.load %arg1[%c0_12, %c6, %c0_13] : memref<8x8x128xf32, #tpu.memory_space<vmem>>, vector<8x1x128xf32>
    %18 = vector.shape_cast %17 : vector<8x1x128xf32> to vector<8x128xf32>
    %19 = arith.addf %16, %18 : vector<8x128xf32>
    %c0_14 = arith.constant 0 : index
    %c7 = arith.constant 7 : index
    %c0_15 = arith.constant 0 : index
    %20 = vector.load %arg1[%c0_14, %c7, %c0_15] : memref<8x8x128xf32, #tpu.memory_space<vmem>>, vector<8x1x128xf32>
    %21 = vector.shape_cast %20 : vector<8x1x128xf32> to vector<8x128xf32>
    %22 = arith.addf %19, %21 : vector<8x128xf32>
    %cst = arith.constant 1.250000e-01 : f32
    %23 = vector.broadcast %cst : f32 to vector<8x128xf32>
    %24 = arith.mulf %22, %23 : vector<8x128xf32>
    %c0_16 = arith.constant 0 : index
    %c0_17 = arith.constant 0 : index
    %25 = vector.load %arg2[%c0_16, %c0_17] : memref<8x128xf32, #tpu.memory_space<vmem>>, vector<8x128xf32>
    tpu.vector_store %arg2[%c0_16, %c0_17], %24 {strides = array<i32>} : memref<8x128xf32, #tpu.memory_space<vmem>>, vector<8x128xf32>,
    return
  }
  func.func @transform_0(%arg0: i32) -> (i32, i32, i32) {
    %c0_i32 = arith.constant 0 : i32
    %c0_i32_0 = arith.constant 0 : i32
    %c0_i32_1 = arith.constant 0 : i32
    return %arg0, %c0_i32, %c0_i32_0 : i32, i32, i32
  }
  func.func @transform_1(%arg0: i32) -> (i32, i32) {
    %c0_i32 = arith.constant 0 : i32
    %c0_i32_0 = arith.constant 0 : i32
    return %arg0, %c0_i32 : i32, i32
  }
}

</mosaic_0001>

<bundles_post_ra>
// kernel: tpu_custom_call.1
= control target key start
LH: loop header
LB: loop body
LE: loop exit
PB: predicated region body
PF: predicated region fallthrough
CT: control target
= control target key end

     0   :  { %6 = vsyncpa [#allocation3], 0  ;;  %s272_s0 = inlined_call_operand.hbm [shape: f32[2,8,128], index: 0, kind: input, shape index: {}]   ;;  %s273_s1 = inlined_call_operand.hbm [shape: f32[2,128], index: 1, kind: output, shape index: {}]  }
   0x1   :  { %7 = vsyncpa [#allocation4], 0 }
   0x2   :  { %12 = vsyncadd [#allocation3], 768  ;;  %s249_s6 = smov [#allocation2]  }
   0x3   :  { %s13_s7 = sshll.u32 %s249_s6, 4  ;;  %s14_s7 = int_to_ptr.vmem [resolvable:$true] %s13_s7 }
   0x4   :  { %s213_s8 = scalar_lea.vmem %s14_s7, 256  ;;  %s217_s9 = scalar_lea.vmem %s14_s7, 1024 }
   0x5   :  { %p214_p0 = scmp.ne.s32.totalorder %s14_s7, %s213_s8  ;;  %p218_p1 = scmp.lt.s32.totalorder %s14_s7, %s14_s7 }
   0x6   :  { %p219_p2 = scmp.lt.s32.totalorder %s217_s9, %s213_s8 }
   0x8   :  { %p220_p3 = por %p219_p2, %p218_p1 }
   0xa   :  { %p221_p4 = pnand %p220_p3, %p214_p0 }
   0xc   :  { %224 = shalt.err (!%p221_p4)
}
   0xd   :  { %s250_s10 = smov 128   ;;  %s251_s11 = smov 8  }
   0xe   :  { %19 = dma.hbm_to_vmem [thread:$0]  %s272_s0, 256, %s14_s7, [#allocation3], %s250_s10, %s250_s10, %s251_s11  }
   0xf   :  { %245 = dma.done.wait [#allocation3], 1024  }
  0x10   :  { %246 = vsyncadd [#allocation3], 4294966272  ;;  %v23_v0 = vld [vmem:[#allocation2] sm:$0x1]  ;;  %v24_v1 = vld [vmem:[#allocation2 + $0x8] sm:$0x1] }
  0x11   :  { %v25_v2 = vld [vmem:[#allocation2 + $0x10] sm:$0x1]  ;;  %v26_v3 = vld [vmem:[#allocation2 + $0x18] sm:$0x1]  ;;  %v27_v4 = vld [vmem:[#allocation2 + $0x20] sm:$0x1] }
  0x12   :  { %v28_v5 = vld [vmem:[#allocation2 + $0x28] sm:$0x1]  ;;  %v29_v6 = vld [vmem:[#allocation2 + $0x30] sm:$0x1]  ;;  %v30_v7 = vld [vmem:[#allocation2 + $0x38] sm:$0x1] }
  0x13   :  { %v31_v8 = vld [vmem:[#allocation2 + $0x1] sm:$0x1]  ;;  %v32_v9 = vld [vmem:[#allocation2 + $0x9] sm:$0x1]  ;;  %v33_v10 = vld [vmem:[#allocation2 + $0x11] sm:$0x1] }
  0x14   :  { %v34_v11 = vld [vmem:[#allocation2 + $0x19] sm:$0x1]  ;;  %v39_v12 = vadd.f32 %v31_v8, %v23_v0  ;;  %v35_v13 = vld [vmem:[#allocation2 + $0x21] sm:$0x1]  ;;  %v36_v14 = vld [vmem:[#allocation2 + $0x29] sm:$0x1]  ;;  %v40_v16 = vadd.f32 %v32_v9, %v24_v1  ;;  %v41_v17 = vadd.f32 %v33_v10, %v25_v2 }
  0x15   :  { %v37_v15 = vld [vmem:[#allocation2 + $0x31] sm:$0x1]  ;;  %v42_v18 = vadd.f32 %v34_v11, %v26_v3  ;;  %v38_v19 = vld [vmem:[#allocation2 + $0x39] sm:$0x1]  ;;  %v43_v20 = vadd.f32 %v35_v13, %v27_v4  ;;  %v44_v21 = vadd.f32 %v36_v14, %v28_v5  ;;  %v47_v23 = vld [vmem:[#allocation2 + $0x2] sm:$0x1] }
  0x16   :  { %v45_v22 = vadd.f32 %v37_v15, %v29_v6  ;;  %v48_v24 = vld [vmem:[#allocation2 + $0xa] sm:$0x1]  ;;  %v46_v25 = vadd.f32 %v38_v19, %v30_v7  ;;  %v49_v26 = vld [vmem:[#allocation2 + $0x12] sm:$0x1]  ;;  %v50_v27 = vld [vmem:[#allocation2 + $0x1a] sm:$0x1]  ;;  %v55_v29 = vadd.f32 %v47_v23, %v39_v12 }
  0x17   :  { %v51_v28 = vld [vmem:[#allocation2 + $0x22] sm:$0x1]  ;;  %v56_v30 = vadd.f32 %v48_v24, %v40_v16  ;;  %v52_v31 = vld [vmem:[#allocation2 + $0x2a] sm:$0x1]  ;;  %v53_v32 = vld [vmem:[#allocation2 + $0x32] sm:$0x1]  ;;  %v57_v34 = vadd.f32 %v49_v26, %v41_v17  ;;  %v58_v35 = vadd.f32 %v50_v27, %v42_v18 }
  0x18   :  { %v54_v33 = vld [vmem:[#allocation2 + $0x3a] sm:$0x1]  ;;  %v59_v36 = vadd.f32 %v51_v28, %v43_v20  ;;  %v60_v37 = vadd.f32 %v52_v31, %v44_v21  ;;  %v61_v38 = vadd.f32 %v53_v32, %v45_v22  ;;  %v63_v40 = vld [vmem:[#allocation2 + $0x3] sm:$0x1]  ;;  %v64_v41 = vld [vmem:[#allocation2 + $0xb] sm:$0x1] }
  0x19   :  { %v62_v39 = vadd.f32 %v54_v33, %v46_v25  ;;  %v65_v42 = vld [vmem:[#allocation2 + $0x13] sm:$0x1]  ;;  %v66_v43 = vld [vmem:[#allocation2 + $0x1b] sm:$0x1]  ;;  %v67_v44 = vld [vmem:[#allocation2 + $0x23] sm:$0x1]  ;;  %v71_v46 = vadd.f32 %v63_v40, %v55_v29  ;;  %v72_v47 = vadd.f32 %v64_v41, %v56_v30 }
  0x1a   :  { %v68_v45 = vld [vmem:[#allocation2 + $0x2b] sm:$0x1]  ;;  %v73_v48 = vadd.f32 %v65_v42, %v57_v34  ;;  %v69_v49 = vld [vmem:[#allocation2 + $0x33] sm:$0x1]  ;;  %v70_v50 = vld [vmem:[#allocation2 + $0x3b] sm:$0x1]  ;;  %v74_v51 = vadd.f32 %v66_v43, %v58_v35  ;;  %v75_v52 = vadd.f32 %v67_v44, %v59_v36 }
  0x1b   :  { %v76_v53 = vadd.f32 %v68_v45, %v60_v37  ;;  %v79_v54 = vld [vmem:[#allocation2 + $0x4] sm:$0x1]  ;;  %v77_v55 = vadd.f32 %v69_v49, %v61_v38  ;;  %v78_v56 = vadd.f32 %v70_v50, %v62_v39  ;;  %v80_v57 = vld [vmem:[#allocation2 + $0xc] sm:$0x1]  ;;  %v81_v58 = vld [vmem:[#allocation2 + $0x14] sm:$0x1] }
  0x1c   :  { %v82_v59 = vld [vmem:[#allocation2 + $0x1c] sm:$0x1]  ;;  %v87_v60 = vadd.f32 %v79_v54, %v71_v46  ;;  %v83_v61 = vld [vmem:[#allocation2 + $0x24] sm:$0x1]  ;;  %v84_v62 = vld [vmem:[#allocation2 + $0x2c] sm:$0x1]  ;;  %v88_v0 = vadd.f32 %v80_v57, %v72_v47  ;;  %v89_v1 = vadd.f32 %v81_v58, %v73_v48 }
  0x1d   :  { %v85_v63 = vld [vmem:[#allocation2 + $0x34] sm:$0x1]  ;;  %v90_v2 = vadd.f32 %v82_v59, %v74_v51  ;;  %v86_v3 = vld [vmem:[#allocation2 + $0x3c] sm:$0x1]  ;;  %v91_v4 = vadd.f32 %v83_v61, %v75_v52  ;;  %v92_v5 = vadd.f32 %v84_v62, %v76_v53  ;;  %v95_v7 = vld [vmem:[#allocation2 + $0x5] sm:$0x1] }
  0x1e   :  { %v93_v6 = vadd.f32 %v85_v63, %v77_v55  ;;  %v96_v8 = vld [vmem:[#allocation2 + $0xd] sm:$0x1]  ;;  %v94_v9 = vadd.f32 %v86_v3, %v78_v56  ;;  %v97_v10 = vld [vmem:[#allocation2 + $0x15] sm:$0x1]  ;;  %v98_v11 = vld [vmem:[#allocation2 + $0x1d] sm:$0x1]  ;;  %v103_v13 = vadd.f32 %v95_v7, %v87_v60 }
  0x1f   :  { %v99_v12 = vld [vmem:[#allocation2 + $0x25] sm:$0x1]  ;;  %v104_v14 = vadd.f32 %v96_v8, %v88_v0  ;;  %v100_v15 = vld [vmem:[#allocation2 + $0x2d] sm:$0x1]  ;;  %v101_v16 = vld [vmem:[#allocation2 + $0x35] sm:$0x1]  ;;  %v105_v18 = vadd.f32 %v97_v10, %v89_v1  ;;  %v106_v19 = vadd.f32 %v98_v11, %v90_v2 }
  0x20   :  { %v102_v17 = vld [vmem:[#allocation2 + $0x3d] sm:$0x1]  ;;  %v107_v20 = vadd.f32 %v99_v12, %v91_v4  ;;  %vm160_vm0 = vcmask 1041409   ;;  %v108_v21 = vadd.f32 %v100_v15, %v92_v5  ;;  %v109_v22 = vadd.f32 %v101_v16, %v93_v6  ;;  %v111_v24 = vld [vmem:[#allocation2 + $0x6] sm:$0x1] }
  0x21   :  { %v110_v23 = vadd.f32 %v102_v17, %v94_v9  ;;  %v112_v25 = vld [vmem:[#allocation2 + $0xe] sm:$0x1]  ;;  %v113_v26 = vld [vmem:[#allocation2 + $0x16] sm:$0x1]  ;;  %v114_v27 = vld [vmem:[#allocation2 + $0x1e] sm:$0x1]  ;;  %v119_v30 = vadd.f32 %v111_v24, %v103_v13 }
  0x22   :  { %v115_v28 = vld [vmem:[#allocation2 + $0x26] sm:$0x1]  ;;  %v116_v29 = vld [vmem:[#allocation2 + $0x2e] sm:$0x1]  ;;  %v120_v31 = vadd.f32 %v112_v25, %v104_v14  ;;  %v121_v32 = vadd.f32 %v113_v26, %v105_v18  ;;  %v117_v33 = vld [vmem:[#allocation2 + $0x36] sm:$0x1]  ;;  %v122_v35 = vadd.f32 %v114_v27, %v106_v19 }
  0x23   :  { %v118_v34 = vld [vmem:[#allocation2 + $0x3e] sm:$0x1]  ;;  %v123_v36 = vadd.f32 %v115_v28, %v107_v20  ;;  %v124_v37 = vadd.f32 %v116_v29, %v108_v21  ;;  %v127_v38 = vld [vmem:[#allocation2 + $0x7] sm:$0x1]  ;;  %v125_v39 = vadd.f32 %v117_v33, %v109_v22  ;;  %v128_v41 = vld [vmem:[#allocation2 + $0xf] sm:$0x1] }
  0x24   :  { %v126_v40 = vadd.f32 %v118_v34, %v110_v23  ;;  %v129_v42 = vld [vmem:[#allocation2 + $0x17] sm:$0x1]  ;;  %v130_v43 = vld [vmem:[#allocation2 + $0x1f] sm:$0x1]  ;;  %v135_v44 = vadd.f32 %v127_v38, %v119_v30  ;;  %v131_v45 = vld [vmem:[#allocation2 + $0x27] sm:$0x1]  ;;  %v136_v48 = vadd.f32 %v128_v41, %v120_v31 }
  0x25   :  { %v132_v46 = vld [vmem:[#allocation2 + $0x2f] sm:$0x1]  ;;  %v133_v47 = vld [vmem:[#allocation2 + $0x37] sm:$0x1]  ;;  %v137_v49 = vadd.f32 %v129_v42, %v121_v32  ;;  %v138_v50 = vadd.f32 %v130_v43, %v122_v35  ;;  %v134_v51 = vld [vmem:[#allocation2 + $0x3f] sm:$0x1]  ;;  %v139_v52 = vadd.f32 %v131_v45, %v123_v36 }
  0x26   :  { %v140_v53 = vadd.f32 %v132_v46, %v124_v37  ;;  %v141_v54 = vadd.f32 %v133_v47, %v125_v39  ;;  %v143_v55 = vmul.f32 0.125, %v135_v44  ;;  %v142_v56 = vadd.f32 %v134_v51, %v126_v40 }
  0x27   :  { %v144_v57 = vmul.f32 0.125, %v136_v48  ;;  %v145_v58 = vmul.f32 0.125, %v137_v49  ;;  %v146_v59 = vmul.f32 0.125, %v138_v50  ;;  %v147_v60 = vmul.f32 0.125, %v139_v52 }
  0x28   :  { %v148_v61 = vmul.f32 0.125, %v140_v53  ;;  %v149_v62 = vmul.f32 0.125, %v141_v54  ;;  %vm163_vm1 = vcmask 1042434   ;;  %v150_v63 = vmul.f32 0.125, %v142_v56 }
  0x29   :  { %v159_v0 = vrot.slane %v144_v57, 7  ;;  %v162_v1 = vrot.slane %v145_v58, 6  ;;  %v165_v2 = vrot.slane %v146_v59, 5  ;;  %vm166_vm2 = vcmask 1043459  }
  0x2a   :  { %v168_v3 = vrot.slane %v147_v60, 4  ;;  %vm169_vm3 = vcmask 1044484   ;;  %v171_v5 = vrot.slane %v148_v61, 3  ;;  %vm172_vm4 = vcmask 1045509  }
  0x2b   :  { %v161_v4 = vsel %vm160_vm0, %v159_v0, %v143_v55  ;;  %v174_v7 = vrot.slane %v149_v62, 2  ;;  %vm175_vm5 = vcmask 1046534   ;;  %v177_v9 = vrot.slane %v150_v63, 1 }
  0x2c   :  { %v164_v6 = vsel %vm163_vm1, %v162_v1, %v161_v4  ;;  %vm178_vm6 = vcmask 1047559  }
  0x2d   :  { %v167_v8 = vsel %vm166_vm2, %v165_v2, %v164_v6 }
  0x2e   :  { %v170_v10 = vsel %vm169_vm3, %v168_v3, %v167_v8 }
  0x2f   :  { %v173_v11 = vsel %vm172_vm4, %v171_v5, %v170_v10 }
  0x30   :  { %v176_v12 = vsel %vm175_vm5, %v174_v7, %v173_v11 }
  0x31   :  { %v179_v13 = vsel %vm178_vm6, %v177_v9, %v176_v12 }
  0x32   :  { %181 = vst [vmem:[#allocation5] sm:$0xff] %v179_v13 }
  0x33   :  { %186 = vsyncadd [#allocation4], 96  ;;  %s252_s0 = smov [#allocation5]  }
  0x34   :  { %s187_s14 = sshll.u32 %s252_s0, 4  ;;  %s188_s14 = int_to_ptr.vmem [resolvable:$true] %s187_s14 }
  0x35   :  { %s225_s15 = scalar_lea.vmem %s188_s14, 32  ;;  %s229_s16 = scalar_lea.vmem %s188_s14, 128 }
  0x36   :  { %p226_p5 = scmp.ne.s32.totalorder %s188_s14, %s225_s15  ;;  %p230_p6 = scmp.lt.s32.totalorder %s188_s14, %s188_s14 }
  0x37   :  { %p231_p7 = scmp.lt.s32.totalorder %s229_s16, %s225_s15 }
  0x39   :  { %p232_p8 = por %p231_p7, %p230_p6 }
  0x3b   :  { %p233_p9 = pnand %p232_p8, %p226_p5 }
  0x3d   :  { %236 = shalt.err (!%p233_p9)
}
  0x3e   :  { %s253_s17 = smov 32   ;;  %s254_s18 = smov 2  }
  0x3f   :  { %193 = dma.vmem_to_hbm [thread:$0]  %s188_s14, 32, %s273_s1, [#allocation4], %s253_s17, %s253_s17, %s254_s18  }
  0x40   :  { %247 = dma.done.wait [#allocation4], 128  }
  0x41   :  { %248 = vsyncadd [#allocation4], 4294967168 }
  0x42   :  { %197 = vsyncpa [#allocation3], 1 }
  0x43   :  { %198 = vsyncpa [#allocation4], 1 }

</bundles_post_ra>
